<compile_context>
chip_gen: v7x
topology: tpu7x:2x2x1
jax: 0.10.0
libtpu: 0.0.40
codegen_flags: <defaults>
</compile_context>

<pallas_src>
import jax
import jax.numpy as jnp
from jax.experimental import pallas as pl
from jax.experimental.pallas import tpu as pltpu


def _merge_matmul_kernel(x_ref, w_ref, o_ref):
    # One (TILE_M, K) x (K, N) tile matmul on the MXU with f32 accumulation.
    o_ref[...] = jnp.dot(
        x_ref[...], w_ref[...], preferred_element_type=jnp.float32
    ).astype(o_ref.dtype)


def _round_up(x, m):
    return ((x + m - 1) // m) * m


def _pick_tile_m(m_tokens, tile_m=None):
    """M tile: 512 by default, capped so there are >= 2 grid steps (keeps both
    v7x TensorCores busy; harmless elsewhere) and never (much) larger than M."""
    if tile_m is not None:
        return tile_m
    half = _round_up(max(1, pl.cdiv(m_tokens, 2)), 8)
    return max(8, min(512, half))


def _vmem_limit_bytes(working_set_bytes):
    desired = max(16 << 20, int(working_set_bytes * 1.25))
    cap = 32 << 20
    try:  # capability-driven upper bound where available
        cap = max(cap, (int(pltpu.get_tpu_info().vmem_capacity_bytes) * 3) // 4)
    except Exception:
        pass
    return min(desired, cap)


def prepare_merging_weight(weight, spatial_merge_size, compute_dtype=jnp.bfloat16):
    """nn.Linear weight (d, d*s*s) with input index c*s*s + ki*s + kj
    -> (s*s*d, d) pre-cast kernel weight with row order (ki*s + kj)*d + c,
    matching the token-major regroup below.  Do this once at init."""
    w = jnp.asarray(weight)
    n_out, k_in = w.shape
    s2 = spatial_merge_size * spatial_merge_size
    d = k_in // s2
    w = w.reshape(n_out, d, s2)          # [n, c, k]
    w = jnp.transpose(w, (2, 1, 0))      # [k, c, n]
    return w.reshape(s2 * d, n_out).astype(compute_dtype)


def merging_linear(x, w_t, *, tile_m=None, out_dtype=jnp.float32):
    """x: (M, K) regrouped patch features; w_t: (K, N) pre-permuted/cast weight."""
    M, K = x.shape
    Kw, N = w_t.shape
    assert K == Kw, (K, Kw)

    compute_dtype = w_t.dtype
    x_c = x if x.dtype == compute_dtype else x.astype(compute_dtype)

    tile_m = _pick_tile_m(M, tile_m)
    grid_m = pl.cdiv(M, tile_m)  # ragged last block handled by Pallas masking

    in_bytes = jnp.dtype(compute_dtype).itemsize
    out_bytes = jnp.dtype(out_dtype).itemsize
    flops = 2 * M * K * N
    bytes_accessed = M * K * in_bytes + K * N * in_bytes + M * N * out_bytes
    working_set = (
        K * N * in_bytes                 # resident weight (single buffer)
        + 2 * tile_m * K * in_bytes      # double-buffered activation tiles
        + 2 * tile_m * N * out_bytes     # double-buffered output tiles
    )
    vmem_limit = _vmem_limit_bytes(working_set)

    def _run(single_buffer_weight):
        if single_buffer_weight:
            # Constant index_map => weight is loaded once; one buffer is enough.
            w_spec = pl.BlockSpec((K, N), lambda i: (0, 0),
                                  pipeline_mode=pl.Buffered(1))
        else:
            w_spec = pl.BlockSpec((K, N), lambda i: (0, 0))
        return pl.pallas_call(
            _merge_matmul_kernel,
            out_shape=jax.ShapeDtypeStruct((M, N), out_dtype),
            grid=(grid_m,),
            in_specs=[
                pl.BlockSpec((tile_m, K), lambda i: (i, 0)),  # streamed activations
                w_spec,                                       # resident weight
            ],
            out_specs=pl.BlockSpec((tile_m, N), lambda i: (i, 0)),
            compiler_params=pltpu.CompilerParams(
                dimension_semantics=("parallel",),  # shard tiles across v7x's 2 TCs
                vmem_limit_bytes=int(vmem_limit),
            ),
            cost_estimate=pl.CostEstimate(
                flops=int(flops), transcendentals=0,
                bytes_accessed=int(bytes_accessed)),
        )(x_c, w_t)

    try:
        return _run(True)
    except Exception:
        # Fallback for jax versions without pipeline_mode support.
        return _run(False)


def mistral3_patch_merger(image_features, image_sizes, weight_t, *,
                          patch_size, spatial_merge_size,
                          tile_m=None, compute_dtype=jnp.bfloat16,
                          out_dtype=jnp.float32):
    """
    image_features: (total_tokens, d)
    image_sizes: list of (H_pixels, W_pixels) python ints
    weight_t: (d*spatial_merge_size**2, d) from prepare_merging_weight()
    """
    d = image_features.shape[-1]
    s = spatial_merge_size

    # Cast once up front so the regroup moves bf16, not f32.
    feats = image_features.astype(compute_dtype)

    # --- glue: torch unfold equivalent, token-major feature order ---
    # feature index = (ki*s + kj)*d + c: each row is s*s contiguous d-wide
    # copies (no cross-lane interleave); the matching permutation was absorbed
    # into the weight, so the contraction equals the original unfold + Linear.
    chunks = []
    offset = 0
    for (H, W) in image_sizes:
        h, w = H // patch_size, W // patch_size
        tok = feats[offset:offset + h * w]
        offset += h * w
        g = tok.reshape(h // s, s, w // s, s, d)
        g = jnp.transpose(g, (0, 2, 1, 3, 4))
        chunks.append(g.reshape((h // s) * (w // s), s * s * d))
    x = jnp.concatenate(chunks, axis=0)
    # TODO(synk): fuse this regroup into the Pallas kernel (scalar-prefetched
    # per-image offsets + strided row gathers) to avoid the (M, d*s*s) HBM buffer.

    # --- hot path: bias-free Linear(d*s*s -> d), tiled bf16 MXU matmul ---
    return merging_linear(x, weight_t, tile_m=tile_m, out_dtype=out_dtype)


if __name__ == "__main__":
    # Small synthetic config: hidden_size=32, patch_size=2, spatial_merge_size=2
    hidden_size = 32
    patch_size = 2
    spatial_merge_size = 2

    key = jax.random.PRNGKey(0)
    k_w, k_x = jax.random.split(key)

    in_features = hidden_size * spatial_merge_size ** 2  # 128
    # nn.Linear(in_features, hidden_size, bias=False) weight layout: (out, in)
    weight = (jax.random.normal(k_w, (hidden_size, in_features), jnp.float32)
              / jnp.sqrt(jnp.float32(in_features)))
    # Hoisted out of the hot path: permutation + transpose + bf16 cast, once.
    weight_t = prepare_merging_weight(weight, spatial_merge_size)

    # Two images: patch grids (8,8) -> 64 tokens and (4,8) -> 32 tokens
    image_sizes = [(16, 16), (8, 16)]
    total_tokens = sum((H // patch_size) * (W // patch_size) for H, W in image_sizes)
    image_features = jax.random.normal(k_x, (total_tokens, hidden_size), jnp.float32)

    out = mistral3_patch_merger(
        image_features, image_sizes, weight_t,
        patch_size=patch_size, spatial_merge_size=spatial_merge_size)
    out = jax.block_until_ready(out)

    # Pure-JAX reference using the ORIGINAL torch unfold feature ordering and the
    # ORIGINAL (un-permuted) weight -> verifies the permutation-into-weight trick.
    def ref(image_features, image_sizes, weight):
        d, s = hidden_size, spatial_merge_size
        chunks = []
        off = 0
        for (H, W) in image_sizes:
            h, w = H // patch_size, W // patch_size
            tok = image_features[off:off + h * w]
            off += h * w
            g = tok.reshape(h // s, s, w // s, s, d)
            g = jnp.transpose(g, (0, 2, 4, 1, 3)).reshape(
                (h // s) * (w // s), d * s * s)
            chunks.append(g)
        x = jnp.concatenate(chunks, axis=0)
        return jnp.dot(x.astype(jnp.bfloat16), weight.T.astype(jnp.bfloat16),
                       preferred_element_type=jnp.float32)

    expected = ref(image_features, image_sizes, weight)
    n_merged = sum(
        (H // patch_size // spatial_merge_size) * (W // patch_size // spatial_merge_size)
        for H, W in image_sizes)
    assert out.shape == expected.shape == (n_merged, hidden_size), (out.shape, expected.shape)
    assert out.dtype == jnp.float32
    assert jnp.allclose(out, expected, atol=2e-3, rtol=2e-3), float(
        jnp.max(jnp.abs(out - expected)))
    print("KERNEL_OK")
</pallas_src>

<mosaic_0001>
module attributes {stable_mosaic.version = 11 : i64} {
  func.func @_merge_matmul_kernel(%arg0: i32, %arg1: memref<16x128xbf16, #tpu.memory_space<vmem>>, %arg2: memref<128x32xbf16, #tpu.memory_space<vmem>>, %arg3: memref<16x32xf32, #tpu.memory_space<vmem>>) attributes {dimension_semantics = [#tpu.dimension_semantics<parallel>], iteration_bounds = array<i64: 2>, scalar_prefetch = 0 : i64, scratch_operands = 0 : i64, tpu.core_type = #tpu.core_type<tc>, window_params = [{transform_indices = @transform_0, window_bounds = array<i64: 16, 128>}, {pipeline_mode = #tpu.pipeline_mode<synchronous>, transform_indices = @transform_1, window_bounds = array<i64: 128, 32>}, {transform_indices = @transform_2, window_bounds = array<i64: 16, 32>}]} {
    %c0 = arith.constant 0 : index
    %c0_0 = arith.constant 0 : index
    %0 = vector.load %arg1[%c0, %c0_0] : memref<16x128xbf16, #tpu.memory_space<vmem>>, vector<16x128xbf16>
    %c0_1 = arith.constant 0 : index
    %c0_2 = arith.constant 0 : index
    %1 = vector.load %arg2[%c0_1, %c0_2] : memref<128x32xbf16, #tpu.memory_space<vmem>>, vector<128x32xbf16>
    %cst = arith.constant dense<0.000000e+00> : vector<16x32xf32>
    %2 = tpu.matmul %0, %1, %cst {dimension_numbers = #tpu.dot_dimension_numbers<[1], [0], [0], [1], [0, 0, 1, 1], [], []>} : vector<16x128xbf16>, vector<128x32xbf16>, vector<16x32xf32> -> vector<16x32xf32>
    %c0_3 = arith.constant 0 : index
    %c0_4 = arith.constant 0 : index
    %3 = vector.load %arg3[%c0_3, %c0_4] : memref<16x32xf32, #tpu.memory_space<vmem>>, vector<16x32xf32>
    tpu.vector_store %arg3[%c0_3, %c0_4], %2 {strides = array<i32>} : memref<16x32xf32, #tpu.memory_space<vmem>>, vector<16x32xf32>,
    return
  }
  func.func @transform_0(%arg0: i32) -> (i32, i32) {
    %c0_i32 = arith.constant 0 : i32
    %c0_i32_0 = arith.constant 0 : i32
    return %arg0, %c0_i32 : i32, i32
  }
  func.func @transform_1(%arg0: i32) -> (i32, i32) {
    %c0_i32 = arith.constant 0 : i32
    %c0_i32_0 = arith.constant 0 : i32
    %c0_i32_1 = arith.constant 0 : i32
    return %c0_i32, %c0_i32_0 : i32, i32
  }
  func.func @transform_2(%arg0: i32) -> (i32, i32) {
    %c0_i32 = arith.constant 0 : i32
    %c0_i32_0 = arith.constant 0 : i32
    return %arg0, %c0_i32 : i32, i32
  }
}

module attributes {stable_mosaic.version = 11 : i64} {
  func.func @_merge_matmul_kernel(%arg0: i32, %arg1: memref<16x128xbf16, #tpu.memory_space<vmem>>, %arg2: memref<128x32xbf16, #tpu.memory_space<vmem>>, %arg3: memref<16x32xf32, #tpu.memory_space<vmem>>) attributes {dimension_semantics = [#tpu.dimension_semantics<parallel>], iteration_bounds = array<i64: 2>, scalar_prefetch = 0 : i64, scratch_operands = 0 : i64, tpu.core_type = #tpu.core_type<tc>, window_params = [{transform_indices = @transform_0, window_bounds = array<i64: 16, 128>}, {pipeline_mode = #tpu.pipeline_mode<synchronous>, transform_indices = @transform_1, window_bounds = array<i64: 128, 32>}, {transform_indices = @transform_2, window_bounds = array<i64: 16, 32>}]} {
    %c0 = arith.constant 0 : index
    %c0_0 = arith.constant 0 : index
    %0 = vector.load %arg1[%c0, %c0_0] : memref<16x128xbf16, #tpu.memory_space<vmem>>, vector<16x128xbf16>
    %c0_1 = arith.constant 0 : index
    %c0_2 = arith.constant 0 : index
    %1 = vector.load %arg2[%c0_1, %c0_2] : memref<128x32xbf16, #tpu.memory_space<vmem>>, vector<128x32xbf16>
    %cst = arith.constant dense<0.000000e+00> : vector<16x32xf32>
    %2 = tpu.matmul %0, %1, %cst {dimension_numbers = #tpu.dot_dimension_numbers<[1], [0], [0], [1], [0, 0, 1, 1], [], []>} : vector<16x128xbf16>, vector<128x32xbf16>, vector<16x32xf32> -> vector<16x32xf32>
    %c0_3 = arith.constant 0 : index
    %c0_4 = arith.constant 0 : index
    %3 = vector.load %arg3[%c0_3, %c0_4] : memref<16x32xf32, #tpu.memory_space<vmem>>, vector<16x32xf32>
    tpu.vector_store %arg3[%c0_3, %c0_4], %2 {strides = array<i32>} : memref<16x32xf32, #tpu.memory_space<vmem>>, vector<16x32xf32>,
    return
  }
  func.func @transform_0(%arg0: i32) -> (i32, i32) {
    %c0_i32 = arith.constant 0 : i32
    %c0_i32_0 = arith.constant 0 : i32
    return %arg0, %c0_i32 : i32, i32
  }
  func.func @transform_1(%arg0: i32) -> (i32, i32) {
    %c0_i32 = arith.constant 0 : i32
    %c0_i32_0 = arith.constant 0 : i32
    %c0_i32_1 = arith.constant 0 : i32
    return %c0_i32, %c0_i32_0 : i32, i32
  }
  func.func @transform_2(%arg0: i32) -> (i32, i32) {
    %c0_i32 = arith.constant 0 : i32
    %c0_i32_0 = arith.constant 0 : i32
    return %arg0, %c0_i32 : i32, i32
  }
}

</mosaic_0001>

<bundles_post_ra>
// kernel: tpu_custom_call.1
= control target key start
LH: loop header
LB: loop body
LE: loop exit
PB: predicated region body
PF: predicated region fallthrough
CT: control target
= control target key end

     0   :  { %7 = vsyncpa [#allocation3], 0  ;;  %s699_s0 = inlined_call_operand.vmem [shape: bf16[24,128], index: 0, kind: input, shape index: {}]   ;;  %s700_s1 = inlined_call_operand.vmem [shape: bf16[128,32], index: 1, kind: input, shape index: {}]   ;;  %s701_s2 = inlined_call_operand.hbm [shape: f32[24,32], index: 2, kind: output, shape index: {}]  }
   0x1   :  { %9 = vsyncpa [#allocation3 + $0x1], 0  ;;  %s558_s9 = smov 0   ;;  %s560_s10 = smov 0  }
   0x2   :  { %s562_s11 = smov 0   ;;  %s564_s12 = smov 0  }
   0x3 LB: > { %s579_s13 = sadd.s32 4294967295, %s536_s12   ;;  %s368_s14 = sadd.s32 4294967294, %s536_s12   ;;  %s536_s12 = sphi %s564_s12, %s707_s12   ;;  %s532_s11 = sphi %s562_s11, %s706_s11   ;;  %s528_s10 = sphi %s560_s10, %s705_s10   ;;  %s524_s9 = sphi %s558_s9, %s704_s9  }
   0x4   : > { %s583_s15 = sadd.s32 1, %s536_s12   ;;  %s69_s16 = sadd.s32 1, %s532_s11 }
   0x5   : > { %s66_s17 = ssub.s32 %s536_s12, %s583_s15  ;;  %p79_p0 = scmp.ne.s32.totalorder %s532_s11, %s528_s10 }
   0x6   : > { %p67_p1 = scmp.eq.s32.totalorder %s66_s17, 0  ;;  %p80_p2 = scmp.eq.s32.totalorder %s579_s13, 1 }
   0x7   : > { %p85_p3 = scmp.ne.s32.totalorder %s528_s10, %s524_s9  ;;  %p86_p4 = scmp.eq.s32.totalorder %s368_s14, 1 }
   0x8   : > { %s594_s18 = scalar_select %p67_p1, %s532_s11, %s69_s16  }
   0x9   : > { %p596_p5 = por %p80_p2, %p79_p0  ;;  %p600_p6 = por %p86_p4, %p85_p3 }
   0xa   : > { %p371_p7 = scmp.ge.s32.totalorder %s536_s12, 1  ;;  %p124_p8 = scmp.lt.s32.totalorder %s536_s12, 3 }
   0xc   : > { %p125_p9 = pnand %p371_p7, %p124_p8 }
   0xd   : > { %v465_v0 = vld [vmem:[%s700_s1] sm:$0xff] (!%p125_p9)   ;;  %v538_v1 = vmov (!%p125_p9), 0.0   ;;  %v466_v2 = vld [vmem:[%s700_s1 + $0x8] sm:$0xff] (!%p125_p9)   ;;  %vm539_vm0 = vmmov (!%p125_p9), 0   ;;  %s613_s25 = sshll.u32 (!%p125_p9), %s579_s13, 1  ;;  %v467_v3 = vld [vmem:[%s700_s1 + $0x10] sm:$0xff] (!%p125_p9)  }
   0xe   : > { %128 = sbr.rel (%p125_p9) target bundleno = 289 (0x121), region = 28  ;;  %403 = vmatprep.subr.bf16.mxu0 (!%p125_p9), %v538_v1  ;;  %419 = vmatprep.mubr.msk.bf16.mxu0 (!%p125_p9), %vm539_vm0, %v538_v1  ;;  %p155_p10 = scmp.lt.s32.totalorder (!%p125_p9), %s613_s25, 2  ;;  %v468_v4 = vld [vmem:[%s700_s1 + $0x18] sm:$0xff] (!%p125_p9)   ;;  %v469_v5 = vld [vmem:[%s700_s1 + $0x20] sm:$0xff] (!%p125_p9)   ;;  %v470_v6 = vld [vmem:[%s700_s1 + $0x28] sm:$0xff] (!%p125_p9)   ;;  %vm283_vm1 = vcmask (!%p125_p9), 261120  }
   0xf   : > { %404 = vmatpush3.bf16.msra.mxu0 (!%p125_p9), %v465_v0  ;;  %v471_v7 = vld [vmem:[%s700_s1 + $0x30] sm:$0xff] (!%p125_p9)   ;;  %v472_v8 = vld [vmem:[%s700_s1 + $0x38] sm:$0xff] (!%p125_p9)   ;;  %s147_s24 = sand.u32 (!%p125_p9), 1, %s528_s10  }
  0x10   : > { %405 = vmatprep.subr.bf16.mxu0 (!%p125_p9), %v538_v1  ;;  %s639_s28 = scalar_lea.sflag (!%p125_p9), [#allocation3], %s147_s24 }
  0x13   : > { %406 = vmatpush3.bf16.msra.mxu0 (!%p125_p9), %v466_v2 }
  0x14   : > { %407 = vmatprep.subr.bf16.mxu0 (!%p125_p9), %v538_v1 }
  0x15   : > { %s156_s26 = scalar_select %p155_p10, %s613_s25, 2 }
  0x17   : > { %s374_s29 = sshll.u32 %s156_s26, 2  ;;  %408 = vmatpush3.bf16.msra.mxu0 %v467_v3  ;;  %s372_s26 = sshll.u32 %s147_s24, 4 }
  0x18   : > { %s158_s4 = scalar_lea.vmem %s699_s0, %s374_s29  ;;  %409 = vmatprep.subr.bf16.mxu0 %v538_v1  ;;  %s149_s27 = scalar_lea.vmem [#allocation2], %s372_s26 }
  0x19   : > { %v473_v9 = vld [vmem:[%s158_s4] sm:$0xff]   ;;  %s295_s29 = ssub.s32 (%p596_p5), 3, %s613_s25 }
  0x1a   : > { %p296_p11 = scmp.lt.s32.totalorder (%p596_p5), %s295_s29, 2 }
  0x1b   : > { %410 = vmatpush3.bf16.msra.mxu0 %v468_v4 }
  0x1c   : > { %411 = vmatprep.subr.bf16.mxu0 %v538_v1 }
  0x1f   : > { %412 = vmatpush3.bf16.msra.mxu0 %v469_v5 }
  0x20   : > { %413 = vmatprep.subr.bf16.mxu0 %v538_v1 }
  0x23   : > { %414 = vmatpush3.bf16.msra.mxu0 %v470_v6 }
  0x24   : > { %415 = vmatprep.subr.bf16.mxu0 %v538_v1 }
  0x27   : > { %416 = vmatpush3.bf16.msra.mxu0 %v471_v7 }
  0x28   : > { %417 = vmatprep.subr.bf16.mxu0 %v538_v1 }
  0x2b   : > { %418 = vmatpush3.bf16.msra.mxu0 %v472_v8 }
  0x2e   : > { %420 = vmatmul.mubr.bf16.vlgmr.msra.gmra.mrb[0].mxu0 %v473_v9 }
  0xfe   : > { %293 = sbr.rel (!%p596_p5) target bundleno = 289 (0x121), region = 32 }
 0x101   : > { %v276_v10 = vpop.f32.mrb[0].mxu0 }
 0x102   : > { %284 = vst.msk [vmem:[%s149_s27] sm:$0xff] %vm283_vm1, %v276_v10  ;;  %v421_v11 = vpop.f32.mrb[1].mxu0 }
 0x103   : > { %v279_v12 = vpop.f32.mrb[2].mxu0 }
 0x104   : > { %285 = vst.msk [vmem:[%s149_s27 + $0x8] sm:$0xff] %vm283_vm1, %v279_v12  ;;  %v422_v13 = vpop.f32.mrb[3].mxu0 }
 0x105   : > { %s709_s29 = smov (!%p296_p11, %s295_s29), 2 }
 0x106   : > { %s644_s30 = sshll.u32 %s709_s29, 7 }
 0x107   : > { %s300_s3 = ssub.s32 256, %s644_s30 }
 0x108   : > { %301 = vsyncadd %s639_s28, %s300_s3  ;;  %p387_p12 = scmp.ne.s32.totalorder %s644_s30, 0  ;;  %s393_s4 = sshll.u32 %s579_s13, 8 }
 0x109   : > { %s653_s19 = scalar_lea.hbm %s701_s2, %s393_s4  ;;  %s306_s7 = sshll.u32 %s149_s27, 4  ;;  %s655_s7 = int_to_ptr.vmem [resolvable:$true] %s306_s7 }
 0x10a   : > { %s474_s25 = scalar_lea.vmem %s655_s7, %s644_s30  ;;  %s540_s8 = smov [#allocation2]  }
 0x10b   : > { %p475_p13 = scmp.ne.s32.totalorder %s655_s7, %s474_s25  ;;  %s478_s14 = sshll.u32 %s540_s8, 4  ;;  %s479_s14 = int_to_ptr.vmem [resolvable:$false] %s478_s14 }
 0x10c   : > { %s480_s13 = scalar_lea.vmem %s479_s14, 512  ;;  %p481_p2 = scmp.lt.s32.totalorder %s655_s7, %s479_s14 }
 0x10d   : > { %p476_p0 = pnand %p475_p13, %p387_p12  ;;  %p482_p3 = scmp.lt.s32.totalorder %s480_s13, %s474_s25 }
 0x10f   : > { %p477_p1 = pneg %p476_p0  ;;  %p483_p4 = por %p482_p3, %p481_p2 }
 0x111   : > { %p484_p5 = pnand %p483_p4, %p477_p1 }
 0x113   : > { %487 = shalt.err (!%p484_p5)
}
 0x114   : > { %s488_s16 = scalar_lea.hbm %s653_s19, %s644_s30  ;;  %s492_s22 = scalar_lea.hbm %s701_s2, 384 }
 0x115   : > { %p489_p7 = scmp.ne.s32.totalorder %s653_s19, %s488_s16  ;;  %p493_p10 = scmp.lt.u32.totalorder %s653_s19, %s701_s2 }
 0x116   : > { %p494_p11 = scmp.lt.u32.totalorder %s492_s22, %s488_s16  ;;  %p496_p0 = scmp.lt.u32.totalorder %s488_s16, %s653_s19 }
 0x117   : > { %p490_p8 = pnand %p489_p7, %p387_p12 }
 0x118   : > { %p495_p13 = por %p494_p11, %p493_p10 }
 0x119   : > { %p491_p9 = pneg %p490_p8 }
 0x11a   : > { %p497_p1 = por %p496_p0, %p495_p13 }
 0x11c   : > { %p498_p2 = pnand %p497_p1, %p491_p9 }
 0x11e   : > { %501 = shalt.err (!%p498_p2)
}
 0x11f   : > { %s541_s26 = smov 128   ;;  %s542_s27 = smov 8  }
 0x120   : > { %312 = dma.vmem_to_hbm [thread:$0]  (%p387_p12), %s655_s7, %s644_s30, %s653_s19, %s639_s28, %s541_s26, %s541_s26, %s542_s27  }
 0x121 PF: > { %p428_p3 = scmp.ge.s32.totalorder %s536_s12, 2  ;;  %s321_s29 = sand.u32 1, %s524_s9  }
 0x122   : > { %s322_s3 = scalar_lea.sflag [#allocation3], %s321_s29 }
 0x123   : > { %p425_p4 = pnand %p428_p3, %p600_p6 }
 0x125   : > { %519 = dma.done.wait (!%p425_p4), %s322_s3, 256  }
 0x126   : > { %521 = vsyncadd (!%p425_p4), %s322_s3, 4294967040  ;;  %p12_p5 = scmp.ge.s32.totalorder %s583_s15, 4   ;;  %s704_s9 = smov %s528_s10 }
 0x127   : > { %s705_s10 = smov %s532_s11  ;;  %s706_s11 = smov %s594_s18 }
 0x128   : > { %s707_s12 = smov %s583_s15  ;;  %14 = sbr.rel (!%p12_p5) target bundleno = 3 (0x3), region = 63 }
 0x12f   :  { %327 = vsyncpa [#allocation3], 1 }
 0x130   :  { %329 = vsyncpa [#allocation3 + $0x1], 1 }

// kernel: tpu_custom_call.1
= control target key start
LH: loop header
LB: loop body
LE: loop exit
PB: predicated region body
PF: predicated region fallthrough
CT: control target
= control target key end

     0   :  { %7 = vsyncpa [#allocation3], 0  ;;  %s699_s0 = inlined_call_operand.vmem [shape: bf16[24,128], index: 0, kind: input, shape index: {}]   ;;  %s700_s1 = inlined_call_operand.vmem [shape: bf16[128,32], index: 1, kind: input, shape index: {}]   ;;  %s701_s2 = inlined_call_operand.hbm [shape: f32[24,32], index: 2, kind: output, shape index: {}]  }
   0x1   :  { %9 = vsyncpa [#allocation3 + $0x1], 0  ;;  %s558_s9 = smov 0   ;;  %s560_s10 = smov 0  }
   0x2   :  { %s562_s11 = smov 0   ;;  %s564_s12 = smov 0  }
   0x3 LB: > { %s579_s13 = sadd.s32 4294967295, %s536_s12   ;;  %s368_s14 = sadd.s32 4294967294, %s536_s12   ;;  %s536_s12 = sphi %s564_s12, %s707_s12   ;;  %s532_s11 = sphi %s562_s11, %s706_s11   ;;  %s528_s10 = sphi %s560_s10, %s705_s10   ;;  %s524_s9 = sphi %s558_s9, %s704_s9  }
   0x4   : > { %s583_s15 = sadd.s32 1, %s536_s12   ;;  %s69_s16 = sadd.s32 1, %s532_s11 }
   0x5   : > { %s66_s17 = ssub.s32 %s536_s12, %s583_s15  ;;  %p79_p0 = scmp.ne.s32.totalorder %s532_s11, %s528_s10 }
   0x6   : > { %p67_p1 = scmp.eq.s32.totalorder %s66_s17, 0  ;;  %p80_p2 = scmp.eq.s32.totalorder %s579_s13, 1 }
   0x7   : > { %p85_p3 = scmp.ne.s32.totalorder %s528_s10, %s524_s9  ;;  %p86_p4 = scmp.eq.s32.totalorder %s368_s14, 1 }
   0x8   : > { %s594_s18 = scalar_select %p67_p1, %s532_s11, %s69_s16  }
   0x9   : > { %p596_p5 = por %p80_p2, %p79_p0  ;;  %p600_p6 = por %p86_p4, %p85_p3 }
   0xa   : > { %p371_p7 = scmp.ge.s32.totalorder %s536_s12, 1  ;;  %p124_p8 = scmp.lt.s32.totalorder %s536_s12, 3 }
   0xc   : > { %p125_p9 = pnand %p371_p7, %p124_p8 }
   0xd   : > { %v465_v0 = vld [vmem:[%s700_s1] sm:$0xff] (!%p125_p9)   ;;  %v538_v1 = vmov (!%p125_p9), 0.0   ;;  %v466_v2 = vld [vmem:[%s700_s1 + $0x8] sm:$0xff] (!%p125_p9)   ;;  %vm539_vm0 = vmmov (!%p125_p9), 0   ;;  %s613_s25 = sshll.u32 (!%p125_p9), %s579_s13, 1  ;;  %v467_v3 = vld [vmem:[%s700_s1 + $0x10] sm:$0xff] (!%p125_p9)  }
   0xe   : > { %128 = sbr.rel (%p125_p9) target bundleno = 289 (0x121), region = 28  ;;  %403 = vmatprep.subr.bf16.mxu0 (!%p125_p9), %v538_v1  ;;  %419 = vmatprep.mubr.msk.bf16.mxu0 (!%p125_p9), %vm539_vm0, %v538_v1  ;;  %p155_p10 = scmp.lt.s32.totalorder (!%p125_p9), %s613_s25, 2  ;;  %v468_v4 = vld [vmem:[%s700_s1 + $0x18] sm:$0xff] (!%p125_p9)   ;;  %v469_v5 = vld [vmem:[%s700_s1 + $0x20] sm:$0xff] (!%p125_p9)   ;;  %v470_v6 = vld [vmem:[%s700_s1 + $0x28] sm:$0xff] (!%p125_p9)   ;;  %vm283_vm1 = vcmask (!%p125_p9), 261120  }
   0xf   : > { %404 = vmatpush3.bf16.msra.mxu0 (!%p125_p9), %v465_v0  ;;  %v471_v7 = vld [vmem:[%s700_s1 + $0x30] sm:$0xff] (!%p125_p9)   ;;  %v472_v8 = vld [vmem:[%s700_s1 + $0x38] sm:$0xff] (!%p125_p9)   ;;  %s147_s24 = sand.u32 (!%p125_p9), 1, %s528_s10  }
  0x10   : > { %405 = vmatprep.subr.bf16.mxu0 (!%p125_p9), %v538_v1  ;;  %s639_s28 = scalar_lea.sflag (!%p125_p9), [#allocation3], %s147_s24 }
  0x13   : > { %406 = vmatpush3.bf16.msra.mxu0 (!%p125_p9), %v466_v2 }
  0x14   : > { %407 = vmatprep.subr.bf16.mxu0 (!%p125_p9), %v538_v1 }
  0x15   : > { %s156_s26 = scalar_select %p155_p10, %s613_s25, 2 }
  0x17   : > { %s374_s29 = sshll.u32 %s156_s26, 2  ;;  %408 = vmatpush3.bf16.msra.mxu0 %v467_v3  ;;  %s372_s26 = sshll.u32 %s147_s24, 4 }
  0x18   : > { %s158_s4 = scalar_lea.vmem %s699_s0, %s374_s29  ;;  %409 = vmatprep.subr.bf16.mxu0 %v538_v1  ;;  %s149_s27 = scalar_lea.vmem [#allocation2], %s372_s26 }
  0x19   : > { %v473_v9 = vld [vmem:[%s158_s4] sm:$0xff]   ;;  %s295_s29 = ssub.s32 (%p596_p5), 3, %s613_s25 }
  0x1a   : > { %p296_p11 = scmp.lt.s32.totalorder (%p596_p5), %s295_s29, 2 }
  0x1b   : > { %410 = vmatpush3.bf16.msra.mxu0 %v468_v4 }
  0x1c   : > { %411 = vmatprep.subr.bf16.mxu0 %v538_v1 }
  0x1f   : > { %412 = vmatpush3.bf16.msra.mxu0 %v469_v5 }
  0x20   : > { %413 = vmatprep.subr.bf16.mxu0 %v538_v1 }
  0x23   : > { %414 = vmatpush3.bf16.msra.mxu0 %v470_v6 }
  0x24   : > { %415 = vmatprep.subr.bf16.mxu0 %v538_v1 }
  0x27   : > { %416 = vmatpush3.bf16.msra.mxu0 %v471_v7 }
  0x28   : > { %417 = vmatprep.subr.bf16.mxu0 %v538_v1 }
  0x2b   : > { %418 = vmatpush3.bf16.msra.mxu0 %v472_v8 }
  0x2e   : > { %420 = vmatmul.mubr.bf16.vlgmr.msra.gmra.mrb[0].mxu0 %v473_v9 }
  0xfe   : > { %293 = sbr.rel (!%p596_p5) target bundleno = 289 (0x121), region = 32 }
 0x101   : > { %v276_v10 = vpop.f32.mrb[0].mxu0 }
 0x102   : > { %284 = vst.msk [vmem:[%s149_s27] sm:$0xff] %vm283_vm1, %v276_v10  ;;  %v421_v11 = vpop.f32.mrb[1].mxu0 }
 0x103   : > { %v279_v12 = vpop.f32.mrb[2].mxu0 }
 0x104   : > { %285 = vst.msk [vmem:[%s149_s27 + $0x8] sm:$0xff] %vm283_vm1, %v279_v12  ;;  %v422_v13 = vpop.f32.mrb[3].mxu0 }
 0x105   : > { %s709_s29 = smov (!%p296_p11, %s295_s29), 2 }
 0x106   : > { %s644_s30 = sshll.u32 %s709_s29, 7 }
 0x107   : > { %s300_s3 = ssub.s32 256, %s644_s30 }
 0x108   : > { %301 = vsyncadd %s639_s28, %s300_s3  ;;  %p387_p12 = scmp.ne.s32.totalorder %s644_s30, 0  ;;  %s393_s4 = sshll.u32 %s579_s13, 8 }
 0x109   : > { %s653_s19 = scalar_lea.hbm %s701_s2, %s393_s4  ;;  %s306_s7 = sshll.u32 %s149_s27, 4  ;;  %s655_s7 = int_to_ptr.vmem [resolvable:$true] %s306_s7 }
 0x10a   : > { %s474_s25 = scalar_lea.vmem %s655_s7, %s644_s30  ;;  %s540_s8 = smov [#allocation2]  }
 0x10b   : > { %p475_p13 = scmp.ne.s32.totalorder %s655_s7, %s474_s25  ;;  %s478_s14 = sshll.u32 %s540_s8, 4  ;;  %s479_s14 = int_to_ptr.vmem [resolvable:$false] %s478_s14 }
 0x10c   : > { %s480_s13 = scalar_lea.vmem %s479_s14, 512  ;;  %p481_p2 = scmp.lt.s32.totalorder %s655_s7, %s479_s14 }
 0x10d   : > { %p476_p0 = pnand %p475_p13, %p387_p12  ;;  %p482_p3 = scmp.lt.s32.totalorder %s480_s13, %s474_s25 }
 0x10f   : > { %p477_p1 = pneg %p476_p0  ;;  %p483_p4 = por %p482_p3, %p481_p2 }
 0x111   : > { %p484_p5 = pnand %p483_p4, %p477_p1 }
 0x113   : > { %487 = shalt.err (!%p484_p5)
}
 0x114   : > { %s488_s16 = scalar_lea.hbm %s653_s19, %s644_s30  ;;  %s492_s22 = scalar_lea.hbm %s701_s2, 384 }
 0x115   : > { %p489_p7 = scmp.ne.s32.totalorder %s653_s19, %s488_s16  ;;  %p493_p10 = scmp.lt.u32.totalorder %s653_s19, %s701_s2 }
 0x116   : > { %p494_p11 = scmp.lt.u32.totalorder %s492_s22, %s488_s16  ;;  %p496_p0 = scmp.lt.u32.totalorder %s488_s16, %s653_s19 }
 0x117   : > { %p490_p8 = pnand %p489_p7, %p387_p12 }
 0x118   : > { %p495_p13 = por %p494_p11, %p493_p10 }
 0x119   : > { %p491_p9 = pneg %p490_p8 }
 0x11a   : > { %p497_p1 = por %p496_p0, %p495_p13 }
 0x11c   : > { %p498_p2 = pnand %p497_p1, %p491_p9 }
 0x11e   : > { %501 = shalt.err (!%p498_p2)
}
 0x11f   : > { %s541_s26 = smov 128   ;;  %s542_s27 = smov 8  }
 0x120   : > { %312 = dma.vmem_to_hbm [thread:$0]  (%p387_p12), %s655_s7, %s644_s30, %s653_s19, %s639_s28, %s541_s26, %s541_s26, %s542_s27  }
 0x121 PF: > { %p428_p3 = scmp.ge.s32.totalorder %s536_s12, 2  ;;  %s321_s29 = sand.u32 1, %s524_s9  }
 0x122   : > { %s322_s3 = scalar_lea.sflag [#allocation3], %s321_s29 }
 0x123   : > { %p425_p4 = pnand %p428_p3, %p600_p6 }
 0x125   : > { %519 = dma.done.wait (!%p425_p4), %s322_s3, 256  }
 0x126   : > { %521 = vsyncadd (!%p425_p4), %s322_s3, 4294967040  ;;  %p12_p5 = scmp.ge.s32.totalorder %s583_s15, 4   ;;  %s704_s9 = smov %s528_s10 }
 0x127   : > { %s705_s10 = smov %s532_s11  ;;  %s706_s11 = smov %s594_s18 }
 0x128   : > { %s707_s12 = smov %s583_s15  ;;  %14 = sbr.rel (!%p12_p5) target bundleno = 3 (0x3), region = 63 }
 0x12f   :  { %327 = vsyncpa [#allocation3], 1 }
 0x130   :  { %329 = vsyncpa [#allocation3 + $0x1], 1 }

</bundles_post_ra>
